<compile_context>
chip_gen: v6e
topology: v6e:2x2x1
jax: 0.10.0
libtpu: 0.0.40
codegen_flags: <defaults>
</compile_context>

<pallas_src>
import math

import jax
import jax.numpy as jnp
from jax.experimental import pallas as pl
from jax.experimental.pallas import tpu as pltpu


def _l1_sum_kernel(x_ref, y_ref, o_ref):
    """Accumulate sum(|x - y|) for one (batch, split) stream into an (8,128) block."""
    c = pl.program_id(2)  # reduction axis (innermost)

    @pl.when(c == 0)
    def _():
        o_ref[...] = jnp.zeros_like(o_ref)

    x = x_ref[...].astype(jnp.float32)          # (1, R, 128)
    y = y_ref[...].astype(jnp.float32)          # (1, R, 128)
    diff = jnp.abs(x - y)                       # pure VPU
    # Fold onto the vreg-shaped (8, 128) output block: elementwise adds only;
    # the single cross-lane reduce per batch happens in the wrapper.
    o_ref[...] += diff.reshape(-1, 8, 128).sum(axis=0).reshape(o_ref.shape)


def l1_loss_with_mask(inp, target, mask, *, max_rows_per_block=8192,
                      vmem_limit_bytes=32 * 1024 * 1024):
    """inp, target: (B, C, H, W); mask: (B, 1). Returns scalar f32 loss.

    Equivalent to torch.mean(torch.abs(input*mask - target*mask)) with the
    per-batch scalar mask broadcast over the flattened feature axis.
    """
    B = inp.shape[0]
    N = math.prod(inp.shape[1:])

    # The mask hoist below (|x*m - y*m| == |m|*|x - y|) is only valid for a
    # per-batch scalar mask.
    if math.prod(mask.shape) != B:
        raise ValueError(f"mask must have exactly B={B} elements (per-batch "
                         f"scalar, e.g. shape (B, 1)); got {mask.shape}")

    x = inp.reshape(B, N)
    y = target.reshape(B, N)
    m = mask.reshape(B).astype(jnp.float32)

    # Lane-dense view: 128 lanes per row.  Choose the chunk count first, then
    # round rows-per-chunk up to a multiple of 8 so ragged shapes pad at most
    # a few (8,128) rows (not a full chunk).
    rows = pl.cdiv(N, 128)
    num_chunks = pl.cdiv(rows, max_rows_per_block)
    R = pl.cdiv(pl.cdiv(rows, num_chunks), 8) * 8      # rows per chunk, x8
    num_chunks = pl.cdiv(rows, R)
    n_pad = num_chunks * R * 128

    if n_pad != N:
        # Only for ragged C*H*W; zero padding contributes 0 to sum(|x - y|)
        # and the denominator below uses the true B*N.
        x = jnp.pad(x, ((0, 0), (0, n_pad - N)))
        y = jnp.pad(y, ((0, 0), (0, n_pad - N)))

    x = x.reshape(B, num_chunks * R, 128)
    y = y.reshape(B, num_chunks * R, 128)

    # Second parallel axis so v7x's two TensorCores both get work when B == 1.
    if B == 1 and num_chunks >= 2 and num_chunks % 2 == 0:
        n_split = 2
    else:
        n_split = 1
    chunks_per_split = num_chunks // n_split

    partial = pl.pallas_call(
        _l1_sum_kernel,
        out_shape=jax.ShapeDtypeStruct((B, n_split, 8, 128), jnp.float32),
        grid_spec=pltpu.PrefetchScalarGridSpec(
            num_scalar_prefetch=0,
            grid=(B, n_split, chunks_per_split),
            in_specs=[
                pl.BlockSpec((1, R, 128),
                             lambda b, s, c: (b, s * chunks_per_split + c, 0)),
                pl.BlockSpec((1, R, 128),
                             lambda b, s, c: (b, s * chunks_per_split + c, 0)),
            ],
            out_specs=pl.BlockSpec((1, 1, 8, 128),
                                   lambda b, s, c: (b, s, 0, 0)),
        ),
        compiler_params=pltpu.CompilerParams(
            dimension_semantics=("parallel", "parallel", "arbitrary"),
            vmem_limit_bytes=vmem_limit_bytes,
        ),
        cost_estimate=pl.CostEstimate(
            flops=3 * B * N,
            transcendentals=0,
            bytes_accessed=2 * B * N * x.dtype.itemsize,
        ),
    )(x, y)

    # Final (tiny) reduce in plain JAX: sum the (n_split, 8, 128) partials per
    # batch, apply the per-batch |mask|, and take the global mean.
    per_batch = partial.sum(axis=(1, 2, 3))            # (B,)
    return jnp.sum(jnp.abs(m) * per_batch) / jnp.float32(B * N)


if __name__ == "__main__":
    key = jax.random.PRNGKey(0)
    k1, k2, k3 = jax.random.split(key, 3)

    B, C, H, W = 2, 4, 16, 16
    inp = jax.random.normal(k1, (B, C, H, W), dtype=jnp.float32)
    tgt = jax.random.normal(k2, (B, C, H, W), dtype=jnp.float32)
    mask = (jax.random.uniform(k3, (B, 1)) > 0.5).astype(jnp.float32)

    loss = l1_loss_with_mask(inp, tgt, mask)
    jax.block_until_ready(loss)

    # Reference check (plain JAX, same semantics as the torch module).
    xr = inp.reshape(B, -1) * mask
    yr = tgt.reshape(B, -1) * mask
    ref = jnp.mean(jnp.abs(xr - yr))
    assert jnp.allclose(loss, ref, rtol=1e-5, atol=1e-6), (loss, ref)

    print("KERNEL_OK")
</pallas_src>

<mosaic_0001>
module attributes {stable_mosaic.version = 11 : i64} {
  func.func @_l1_sum_kernel(%arg0: i32, %arg1: i32, %arg2: i32, %arg3: memref<1x8x128xf32, #tpu.memory_space<vmem>>, %arg4: memref<1x8x128xf32, #tpu.memory_space<vmem>>, %arg5: memref<1x1x8x128xf32, #tpu.memory_space<vmem>>) attributes {dimension_semantics = [#tpu.dimension_semantics<parallel>, #tpu.dimension_semantics<parallel>, #tpu.dimension_semantics<arbitrary>], iteration_bounds = array<i64: 2, 1, 1>, scalar_prefetch = 0 : i64, scratch_operands = 0 : i64, tpu.core_type = #tpu.core_type<tc>, window_params = [{transform_indices = @transform_0, window_bounds = array<i64: 1, 8, 128>}, {transform_indices = @transform_1, window_bounds = array<i64: 1, 8, 128>}, {transform_indices = @transform_2, window_bounds = array<i64: 1, 1, 8, 128>}]} {
    %c0_i32 = arith.constant 0 : i32
    %0 = arith.cmpi eq, %arg2, %c0_i32 : i32
    %1 = arith.extui %0 : i1 to i32
    %c0_i32_0 = arith.constant 0 : i32
    %2 = arith.cmpi ne, %1, %c0_i32_0 : i32
    scf.if %2 {
      %cst_14 = arith.constant 0.000000e+00 : f32
      %12 = vector.broadcast %cst_14 : f32 to vector<1x1x8x128xf32>
      %c0_15 = arith.constant 0 : index
      %c0_16 = arith.constant 0 : index
      %c0_17 = arith.constant 0 : index
      %c0_18 = arith.constant 0 : index
      %13 = vector.load %arg5[%c0_15, %c0_16, %c0_17, %c0_18] : memref<1x1x8x128xf32, #tpu.memory_space<vmem>>, vector<1x1x8x128xf32>
      tpu.vector_store %arg5[%c0_15, %c0_16, %c0_17, %c0_18], %12 {strides = array<i32>} : memref<1x1x8x128xf32, #tpu.memory_space<vmem>>, vector<1x1x8x128xf32>,
    } else {
    }
    %c0 = arith.constant 0 : index
    %c0_1 = arith.constant 0 : index
    %c0_2 = arith.constant 0 : index
    %3 = vector.load %arg3[%c0, %c0_1, %c0_2] : memref<1x8x128xf32, #tpu.memory_space<vmem>>, vector<1x8x128xf32>
    %c0_3 = arith.constant 0 : index
    %c0_4 = arith.constant 0 : index
    %c0_5 = arith.constant 0 : index
    %4 = vector.load %arg4[%c0_3, %c0_4, %c0_5] : memref<1x8x128xf32, #tpu.memory_space<vmem>>, vector<1x8x128xf32>
    %5 = arith.subf %3, %4 : vector<1x8x128xf32>
    %6 = math.absf %5 : vector<1x8x128xf32>
    %c0_6 = arith.constant 0 : index
    %c0_7 = arith.constant 0 : index
    %c0_8 = arith.constant 0 : index
    %c0_9 = arith.constant 0 : index
    %7 = vector.load %arg5[%c0_6, %c0_7, %c0_8, %c0_9] : memref<1x1x8x128xf32, #tpu.memory_space<vmem>>, vector<1x1x8x128xf32>
    %cst = arith.constant dense<0.000000e+00> : vector<8x128xf32>
    %8 = vector.multi_reduction <add>, %6, %cst [0] : vector<1x8x128xf32> to vector<8x128xf32>
    %9 = vector.shape_cast %8 : vector<8x128xf32> to vector<1x1x8x128xf32>
    %10 = arith.addf %7, %9 : vector<1x1x8x128xf32>
    %c0_10 = arith.constant 0 : index
    %c0_11 = arith.constant 0 : index
    %c0_12 = arith.constant 0 : index
    %c0_13 = arith.constant 0 : index
    %11 = vector.load %arg5[%c0_10, %c0_11, %c0_12, %c0_13] : memref<1x1x8x128xf32, #tpu.memory_space<vmem>>, vector<1x1x8x128xf32>
    tpu.vector_store %arg5[%c0_10, %c0_11, %c0_12, %c0_13], %10 {strides = array<i32>} : memref<1x1x8x128xf32, #tpu.memory_space<vmem>>, vector<1x1x8x128xf32>,
    return
  }
  func.func @transform_0(%arg0: i32, %arg1: i32, %arg2: i32) -> (i32, i32, i32) {
    %c1_i32 = arith.constant 1 : i32
    %0 = arith.muli %arg1, %c1_i32 : i32
    %1 = arith.addi %0, %arg2 : i32
    %c0_i32 = arith.constant 0 : i32
    %c0_i32_0 = arith.constant 0 : i32
    return %arg0, %1, %c0_i32 : i32, i32, i32
  }
  func.func @transform_1(%arg0: i32, %arg1: i32, %arg2: i32) -> (i32, i32, i32) {
    %c1_i32 = arith.constant 1 : i32
    %0 = arith.muli %arg1, %c1_i32 : i32
    %1 = arith.addi %0, %arg2 : i32
    %c0_i32 = arith.constant 0 : i32
    %c0_i32_0 = arith.constant 0 : i32
    return %arg0, %1, %c0_i32 : i32, i32, i32
  }
  func.func @transform_2(%arg0: i32, %arg1: i32, %arg2: i32) -> (i32, i32, i32, i32) {
    %c0_i32 = arith.constant 0 : i32
    %c0_i32_0 = arith.constant 0 : i32
    %c0_i32_1 = arith.constant 0 : i32
    return %arg0, %arg1, %c0_i32, %c0_i32_0 : i32, i32, i32, i32
  }
}

</mosaic_0001>

<bundles_post_ra>
// kernel: tpu_custom_call.1
= control target key start
LH: loop header
LB: loop body
LE: loop exit
PB: predicated region body
PF: predicated region fallthrough
CT: control target
= control target key end

     0   :  { %7 = vsyncpa [#allocation3], 0  ;;  %s773_s0 = inlined_call_operand.hbm [shape: f32[2,8,128], index: 0, kind: input, shape index: {}]   ;;  %s774_s1 = inlined_call_operand.hbm [shape: f32[2,8,128], index: 1, kind: input, shape index: {}]   ;;  %s775_s2 = inlined_call_operand.hbm [shape: f32[2,1,8,128], index: 2, kind: output, shape index: {}]  }
   0x1   :  { %9 = vsyncpa [#allocation3 + $0x1], 0 }
   0x2   :  { %10 = vsyncpa [#allocation6], 0 }
   0x3   :  { %12 = vsyncpa [#allocation6 + $0x1], 0 }
   0x4   :  { %13 = vsyncpa [#allocation4], 0 }
   0x5   :  { %15 = vsyncpa [#allocation4 + $0x1], 0  ;;  %s612_s9 = smov 0   ;;  %s614_s10 = smov 0  }
   0x6   :  { %s616_s11 = smov 0   ;;  %s618_s12 = smov 0  }
   0x7   :  { %s620_s13 = smov 0   ;;  %s622_s14 = smov 0  }
   0x8 LB: > { %s368_s15 = sadd.s32 4294967295, %s592_s14   ;;  %s369_s16 = sadd.s32 4294967294, %s592_s14   ;;  %s592_s14 = sphi %s622_s14, %s21_s14   ;;  %s588_s13 = sphi %s620_s13, %s787_s13   ;;  %s584_s12 = sphi %s618_s12, %s786_s12   ;;  %s580_s11 = sphi %s616_s11, %s785_s11   ;;  %s576_s10 = sphi %s614_s10, %s784_s10   ;;  %s572_s9 = sphi %s612_s9, %s783_s9  }
   0x9   : > { %s40_s17 = sadd.s32 1, %s588_s13  ;;  %s51_s18 = sadd.s32 1, %s580_s11 }
   0xa   : > { %p42_p0 = scmp.ge.s32.totalorder %s40_s17, 2  ;;  %p58_p1 = scmp.ne.s32.totalorder %s580_s11, %s576_s10 }
   0xb   : > { %p59_p2 = scmp.eq.s32.totalorder %s592_s14, 0  ;;  %p64_p3 = scmp.ne.s32.totalorder %s576_s10, %s572_s9 }
   0xc   : > { %s789_s17 = smov (%p42_p0, %s40_s17), 0  ;;  %p65_p5 = scmp.eq.s32.totalorder %s368_s15, 0 }
   0xd   : > { %p653_p4 = por %p59_p2, %p58_p1  ;;  %s46_s20 = ssub.s32 %s588_s13, %s789_s17 }
   0xe   : > { %p120_p6 = scmp.eq.s32.totalorder %s368_s15, 1  ;;  %p49_p7 = scmp.eq.s32.totalorder %s46_s20, 0 }
   0xf   : > { %p659_p8 = por %p65_p5, %p64_p3  ;;  %p126_p10 = scmp.eq.s32.totalorder %s369_s16, 1 }
  0x10   : > { %p663_p9 = por %p120_p6, %p58_p1  ;;  %p401_p13 = scmp.lt.s32.totalorder %s592_s14, 2 }
  0x11   : > { %s668_s23 = scalar_select %p49_p7, %s580_s11, %s51_s18  }
  0x12   : > { %p670_p11 = por %p126_p10, %p64_p3  ;;  %s677_s25 = sand.u32 1, %s580_s11  }
  0x13   : > { %s372_s26 = sshll.u32 %s677_s25, 3  ;;  %s373_s27 = sshll.u32 %s588_s13, 7 }
  0x14   : > { %s157_s30 = scalar_lea.hbm %s773_s0, %s373_s27  ;;  %s150_s3 = scalar_lea.vmem [#allocation2], %s372_s26 }
  0x15   : > { %s159_s4 = sshll.u32 %s150_s3, 4  ;;  %p686_p0 = pnand %p401_p13, %p653_p4  ;;  %s160_s4 = int_to_ptr.vmem [resolvable:$true] %s159_s4 }
  0x16   : > { %p376_p1 = scmp.ge.s32.totalorder %s592_s14, 1  ;;  %p184_p2 = scmp.lt.s32.totalorder %s592_s14, 3 }
  0x17   : > { %s147_s6 = scalar_lea.sflag [#allocation3], %s677_s25  ;;  %p454_p3 = pneg %p686_p0 }
  0x18   : > { %s465_s7 = scalar_lea.vmem %s160_s4, 128  ;;  %s594_s8 = smov [#allocation2]  }
  0x19   : > { %p466_p5 = scmp.ne.s32.totalorder %s160_s4, %s465_s7  ;;  %s470_s15 = sshll.u32 %s594_s8, 4  ;;  %s471_s15 = int_to_ptr.vmem [resolvable:$false] %s470_s15 }
  0x1a   : > { %s472_s16 = scalar_lea.vmem %s471_s15, 256  ;;  %p473_p4 = scmp.lt.s32.totalorder %s160_s4, %s471_s15 }
  0x1b   : > { %p468_p6 = pnand %p466_p5, %p454_p3  ;;  %p474_p10 = scmp.lt.s32.totalorder %s472_s16, %s465_s7 }
  0x1d   : > { %p469_p7 = pneg %p468_p6  ;;  %p475_p13 = por %p474_p10, %p473_p4 }
  0x1f   : > { %p476_p12 = pnand %p475_p13, %p469_p7 }
  0x21   : > { %479 = shalt.err (!%p476_p12)
}
  0x22   : > { %393 = dma.hbm_to_vmem [thread:$0]  (!%p686_p0), %s157_s30, 128, %s160_s4, %s147_s6  }
  0x23   : > { %p704_p5 = pnand %p376_p1, %p184_p2  ;;  %s177_s28 = scalar_lea.hbm %s774_s1, %s373_s27 }
  0x24   : > { %s170_s29 = scalar_lea.vmem [#allocation5], %s372_s26  ;;  %s167_s7 = scalar_lea.sflag [#allocation6], %s677_s25 }
  0x25   : > { %s179_s3 = sshll.u32 %s170_s29, 4  ;;  %s595_s30 = smov [#allocation5]   ;;  %s180_s3 = int_to_ptr.vmem [resolvable:$true] %s179_s3 }
  0x26   : > { %s493_s8 = scalar_lea.vmem %s180_s3, 128  ;;  %s498_s4 = sshll.u32 %s595_s30, 4  ;;  %s499_s4 = int_to_ptr.vmem [resolvable:$false] %s498_s4 }
  0x27   : > { %p494_p12 = scmp.ne.s32.totalorder %s180_s3, %s493_s8  ;;  %s500_s6 = scalar_lea.vmem %s499_s4, 256 }
  0x28   : > { %p501_p1 = scmp.lt.s32.totalorder %s180_s3, %s499_s4  ;;  %p502_p2 = scmp.lt.s32.totalorder %s500_s6, %s493_s8 }
  0x29   : > { %p496_p6 = pnand %p494_p12, %p454_p3 }
  0x2a   : > { %p503_p4 = por %p502_p2, %p501_p1 }
  0x2b   : > { %p497_p7 = pneg %p496_p6 }
  0x2d   : > { %p504_p10 = pnand %p503_p4, %p497_p7 }
  0x2f   : > { %507 = shalt.err (!%p504_p10)
}
  0x30   : > { %396 = dma.hbm_to_vmem [thread:$0]  (!%p686_p0), %s177_s28, 128, %s180_s3, %s167_s7  }
  0x31   : > { %188 = sbr.rel (%p704_p5) target bundleno = 81 (0x51), region = 28  ;;  %s720_s25 = sand.u32 (!%p704_p5), 1, %s576_s10  }
  0x32   : > { %s377_s26 = sshll.u32 (!%p704_p5), %s720_s25, 3  ;;  %s191_s27 = scalar_lea.sflag (!%p704_p5), [#allocation3], %s720_s25 }
  0x33   : > { %s194_s15 = scalar_lea.vmem (!%p704_p5), [#allocation2], %s377_s26 }
  0x36   : > { %559 = dma.done.wait (%p659_p8), %s191_s27, 128  }
  0x37   : > { %561 = vsyncadd (%p659_p8), %s191_s27, 4294967168  ;;  %s200_s5 = scalar_lea.sflag [#allocation6], %s720_s25  ;;  %s203_s16 = scalar_lea.vmem [#allocation5], %s377_s26 }
  0x38   : > { %563 = dma.done.wait (%p659_p8), %s200_s5, 128  }
  0x39   : > { %565 = vsyncadd (%p659_p8), %s200_s5, 4294967168  ;;  %v236_v0 = vld [vmem:[%s194_s15] sm:$0xff]  ;;  %v237_v1 = vld [vmem:[%s203_s16] sm:$0xff]  ;;  %s381_s18 = sshll.u32 %s584_s12, 7  ;;  %s228_s19 = scalar_lea.vmem [#allocation7], %s377_s26 }
  0x3a   : > { %v238_v2 = vsub.f32 %v236_v0, %v237_v1  ;;  %s259_s20 = sshll.u32 %s228_s19, 4  ;;  %s257_s3 = scalar_lea.hbm %s775_s2, %s381_s18  ;;  %s260_s20 = int_to_ptr.vmem [resolvable:$true] %s259_s20 }
  0x3b   : > { %s245_s7 = scalar_lea.sflag [#allocation4], %s720_s25  ;;  %s508_s8 = scalar_lea.vmem %s260_s20, 128 }
  0x3c   : > { %v239_v3 = vand.u32 2147483647, %v238_v2  ;;  %p509_p0 = scmp.ne.s32.totalorder %s260_s20, %s508_s8  ;;  %s596_s21 = smov [#allocation7]  }
  0x3d   : > { %s512_s30 = sshll.u32 %s596_s21, 4  ;;  %s513_s30 = int_to_ptr.vmem [resolvable:$false] %s512_s30 }
  0x3e   : > { %243 = vst [vmem:[%s228_s19] sm:$0xff] %v239_v3  ;;  %p510_p8 = pnand %p509_p0, %p663_p9  ;;  %s514_s4 = scalar_lea.vmem %s513_s30, 256 }
  0x3f   : > { %p515_p13 = scmp.lt.s32.totalorder %s260_s20, %s513_s30  ;;  %p516_p5 = scmp.lt.s32.totalorder %s514_s4, %s508_s8 }
  0x40   : > { %p511_p3 = pneg %p510_p8 }
  0x41   : > { %p517_p12 = por %p516_p5, %p515_p13 }
  0x43   : > { %p518_p6 = pnand %p517_p12, %p511_p3 }
  0x45   : > { %521 = shalt.err (!%p518_p6)
}
  0x46   : > { %s522_s12 = scalar_lea.hbm %s257_s3, 128  ;;  %s526_s26 = scalar_lea.hbm %s775_s2, 256 }
  0x47   : > { %p523_p7 = scmp.ne.s32.totalorder %s257_s3, %s522_s12  ;;  %p527_p4 = scmp.lt.s32.totalorder %s257_s3, %s775_s2 }
  0x48   : > { %p528_p10 = scmp.lt.s32.totalorder %s526_s26, %s522_s12 }
  0x49   : > { %p524_p1 = pnand %p523_p7, %p663_p9 }
  0x4a   : > { %p529_p0 = por %p528_p10, %p527_p4 }
  0x4b   : > { %p525_p2 = pneg %p524_p1 }
  0x4d   : > { %p530_p8 = pnand %p529_p0, %p525_p2 }
  0x4f   : > { %533 = shalt.err (!%p530_p8)
}
  0x50   : > { %388 = dma.vmem_to_hbm [thread:$0]  (%p663_p9), %s260_s20, 128, %s257_s3, %s245_s7  }
  0x51 PF: > { %s271_s5 = sand.u32 1, %s572_s9   ;;  %p782_p3 = scmp.ge.s32.totalorder %s592_s14, 2 }
  0x52   : > { %s272_s16 = scalar_lea.sflag [#allocation4], %s271_s5 }
  0x53   : > { %p398_p13 = pnand %p782_p3, %p670_p11 }
  0x55   : > { %p399_p5 = pneg %p398_p13 }
  0x57   : > { %567 = dma.done.wait (%p399_p5), %s272_s16, 128  }
  0x58   : > { %569 = vsyncadd (%p399_p5), %s272_s16, 4294967168  ;;  %s21_s14 = sadd.s32 1, %s592_s14   ;;  %s783_s9 = smov %s576_s10 }
  0x59   : > { %p18_p12 = scmp.ge.s32.totalorder %s21_s14, 4   ;;  %s784_s10 = smov %s580_s11 }
  0x5a   : > { %s785_s11 = smov %s668_s23  ;;  %s786_s12 = smov %s588_s13 }
  0x5b   : > { %s787_s13 = smov %s789_s17  ;;  %20 = sbr.rel (!%p18_p12) target bundleno = 8 (0x8), region = 90 }
  0x60   :  { %277 = vsyncpa [#allocation3], 1 }
  0x61   :  { %279 = vsyncpa [#allocation3 + $0x1], 1 }
  0x62   :  { %280 = vsyncpa [#allocation6], 1 }
  0x63   :  { %282 = vsyncpa [#allocation6 + $0x1], 1 }
  0x64   :  { %283 = vsyncpa [#allocation4], 1 }
  0x65   :  { %285 = vsyncpa [#allocation4 + $0x1], 1 }

</bundles_post_ra>
